<compile_context>
chip_gen: v7x
topology: tpu7x:2x2x1
jax: 0.10.0
libtpu: 0.0.40
codegen_flags: <defaults>
</compile_context>

<pallas_src>
import jax
import jax.numpy as jnp
from jax import lax
from jax.experimental import pallas as pl
from jax.experimental.pallas import tpu as pltpu


def _round_up(x, m):
    return (x + m - 1) // m * m


def _make_conv_relu_kernel(K, wp, tile_rows, c_out):
    """Fused conv + ReLU kernel body for static K / row width / tile sizes."""

    def kernel(x_ref, w_ref, o_ref):
        # x_ref: (M_in, Cin)       whole padded+flattened sample; its block
        #                          index is constant along the row-tile grid
        #                          axis, so it is DMA'd once per sample.
        # w_ref: (K*K, Cin, Cout)  per-tap weights (constant block -> one DMA).
        # o_ref: (tile_rows, Cout) one tile of flattened stride-1 output rows.
        base = pl.multiple_of(pl.program_id(1) * tile_rows, 8)
        acc = jnp.zeros((tile_rows, c_out), jnp.float32)
        for kh in range(K):                      # K*K taps, unrolled
            for kw in range(K):
                t = kh * wp + kw                 # static flat shift of this tap
                xs = x_ref[pl.ds(base + t, tile_rows), :]      # (tile_rows, Cin)
                acc = acc + jnp.dot(xs, w_ref[kh * K + kw],
                                    preferred_element_type=jnp.float32)
        o_ref[...] = jnp.maximum(acc, 0.0).astype(o_ref.dtype)  # fused ReLU

    return kernel


def conv2d_block_forward(x_nchw, weight_oihw, stride=(1, 1),
                         compute_dtype=jnp.float32):
    """Conv2dBlock.forward: Conv2d(kernel=K, padding=K//2, bias=False) + ReLU.

    x_nchw      : (N, Cin, H, W)    float32
    weight_oihw : (Cout, Cin, K, K) float32
    returns     : (N, Cout, Hout, Wout) float32
    """
    n, c_in, h, w = x_nchw.shape
    c_out, c_in_w, kh_sz, kw_sz = weight_oihw.shape
    assert c_in == c_in_w and kh_sz == kw_sz
    K = kh_sz
    pad = K // 2                      # matches PyTorch padding=[K//2, K//2]
    sh, sw = stride
    h_out = (h + 2 * pad - K) // sh + 1
    w_out = (w + 2 * pad - K) // sw + 1

    hp, wp = h + 2 * pad, w + 2 * pad
    h1 = hp - K + 1                   # stride-1 output rows
    w1 = wp - K + 1                   # stride-1 output cols

    # ---- wrapper-side layout plumbing (only ~input-sized arrays) -----------
    x_nhwc = jnp.transpose(x_nchw, (0, 2, 3, 1))
    x_pad = jnp.pad(x_nhwc, ((0, 0), (pad, pad), (pad, pad), (0, 0)))
    x_flat = x_pad.reshape(n, hp * wp, c_in)

    # Per-tap weights: OIHW -> (K, K, Cin, Cout) -> (K*K, Cin, Cout); tap
    # [kh*K + kw][c, o] == weight_oihw[o, c, kh, kw].
    w_taps = jnp.transpose(weight_oihw, (2, 3, 1, 0)).reshape(K * K, c_in, c_out)

    # ---- tiling -------------------------------------------------------------
    m_acc = h1 * wp                   # flat stride-1 output rows per sample
    # Row tile: cap at 512 flat rows (measured ~85% HBM roofline on the
    # 128 MiB-VMEM parts), but target >= 4 inner tiles so v7x's 2 TensorCores
    # each get >= 2 pipelined steps even at small M.  Multiple of the sublane
    # granule (8 for f32, 16 for bf16 operands).
    granule = 16 if compute_dtype == jnp.bfloat16 else 8
    tile_rows = max(granule, min(512, _round_up(pl.cdiv(m_acc, 4), granule)))
    n_tiles = pl.cdiv(m_acc, tile_rows)
    m_out = n_tiles * tile_rows
    # Input rows must cover every in-kernel slice (largest tap shift is
    # (K-1)*(wp+1)); the extra rows are zeros, so the result is exact.
    m_in = _round_up(m_out + (K - 1) * (wp + 1), granule)
    x_flat = jnp.pad(x_flat, ((0, 0), (0, m_in - hp * wp), (0, 0)))

    x_flat = x_flat.astype(compute_dtype)
    w_taps = w_taps.astype(compute_dtype)

    kernel = _make_conv_relu_kernel(K, wp, tile_rows, c_out)

    # VMEM per step: 2*(m_in*Cin) + 2*(tile_rows*Cout) + 2*(K*K*Cin*Cout)
    # elements (tile-padded) — tens of KiB here, far below even v7x's budget,
    # so no vmem_limit_bytes override is needed.  Re-derive tile_rows before
    # scaling channels/spatial up on the 64 MiB (v7x) part.
    out_flat = pl.pallas_call(
        kernel,
        out_shape=jax.ShapeDtypeStruct((n, m_out, c_out), x_nchw.dtype),
        grid_spec=pltpu.PrefetchScalarGridSpec(
            num_scalar_prefetch=0,
            grid=(n, n_tiles),
            in_specs=[
                # Whole padded sample; block index constant along the row-tile
                # axis -> fetched once per sample by the pipeline.
                pl.BlockSpec((None, m_in, c_in), lambda b, i: (b, 0, 0)),
                # Weights: constant block -> a single DMA for the whole call.
                pl.BlockSpec((K * K, c_in, c_out), lambda b, i: (0, 0, 0)),
            ],
            out_specs=pl.BlockSpec((None, tile_rows, c_out),
                                   lambda b, i: (b, i, 0)),
        ),
        compiler_params=pltpu.CompilerParams(
            dimension_semantics=("parallel", "parallel")),
    )(x_flat, w_taps)

    # Undo the flattening: keep the valid columns, then apply the stride by
    # subsampling (ReLU is pointwise + monotone, so this is exact).
    # TODO(synk): stride != (1,1) currently computes the stride-1 conv and
    # subsamples (sh*sw extra MXU work); a dedicated strided kernel would use
    # pl.ds(..., stride=...) slices instead.
    out1 = out_flat[:, :h1 * wp, :].reshape(n, h1, wp, c_out)[:, :, :w1, :]
    out = out1[:, ::sh, ::sw, :]
    assert out.shape == (n, h_out, w_out, c_out)
    return jnp.transpose(out, (0, 3, 1, 2))      # back to NCHW


def _reference(x_nchw, weight_oihw, stride):
    y = lax.conv_general_dilated(
        x_nchw, weight_oihw,
        window_strides=stride,
        padding=[(weight_oihw.shape[2] // 2,) * 2,
                 (weight_oihw.shape[3] // 2,) * 2],
        dimension_numbers=("NCHW", "OIHW", "NCHW"),
    )
    return jnp.maximum(y, 0.0)


if __name__ == "__main__":
    key = jax.random.PRNGKey(0)
    kx, kw = jax.random.split(key)

    # Shapes consistent with Conv2dBlock(in=4, out=8, kernel=3, stride=(1,1))
    N, C_IN, H, W = 2, 4, 16, 16
    C_OUT, K = 8, 3
    STRIDE = (1, 1)

    x = jax.random.normal(kx, (N, C_IN, H, W), dtype=jnp.float32)
    # Deterministic weight init (kaiming-uniform-like bound, as nn.Conv2d would)
    fan_in = C_IN * K * K
    bound = 1.0 / (fan_in ** 0.5)
    weight = jax.random.uniform(kw, (C_OUT, C_IN, K, K),
                                minval=-bound, maxval=bound,
                                dtype=jnp.float32)

    out = jax.block_until_ready(conv2d_block_forward(x, weight, stride=STRIDE))
    ref = jax.block_until_ready(_reference(x, weight, STRIDE))
    assert out.shape == ref.shape, (out.shape, ref.shape)
    assert jnp.allclose(out, ref, atol=1e-4, rtol=1e-4), "mismatch vs reference"

    print("KERNEL_OK")
</pallas_src>

<mosaic_0001>
module attributes {stable_mosaic.version = 11 : i64} {
  func.func @kernel(%arg0: i32, %arg1: i32, %arg2: memref<1x328x4xf32, #tpu.memory_space<vmem>>, %arg3: memref<9x4x8xf32, #tpu.memory_space<vmem>>, %arg4: memref<1x72x8xf32, #tpu.memory_space<vmem>>) attributes {dimension_semantics = [#tpu.dimension_semantics<parallel>, #tpu.dimension_semantics<parallel>], iteration_bounds = array<i64: 2, 4>, scalar_prefetch = 0 : i64, scratch_operands = 0 : i64, tpu.core_type = #tpu.core_type<tc>, window_params = [{transform_indices = @transform_0, window_bounds = array<i64: 1, 328, 4>}, {pipeline_mode = #tpu.pipeline_mode<synchronous>, transform_indices = @transform_1, window_bounds = array<i64: 9, 4, 8>}, {transform_indices = @transform_2, window_bounds = array<i64: 1, 72, 8>}]} {
    %c72_i32 = arith.constant 72 : i32
    %0 = arith.muli %arg1, %c72_i32 : i32
    %1 = tpu.assume_multiple %0, 8 : i32
    %cst = arith.constant 0.000000e+00 : f32
    %2 = vector.broadcast %cst : f32 to vector<72x8xf32>
    %c0_i32 = arith.constant 0 : i32
    %3 = arith.addi %1, %c0_i32 : i32
    %c0 = arith.constant 0 : index
    %4 = arith.index_cast %3 : i32 to index
    %c0_0 = arith.constant 0 : index
    %5 = vector.load %arg2[%c0, %4, %c0_0] : memref<1x328x4xf32, #tpu.memory_space<vmem>>, vector<1x72x4xf32>
    %6 = vector.shape_cast %5 : vector<1x72x4xf32> to vector<72x4xf32>
    %c0_1 = arith.constant 0 : index
    %c0_2 = arith.constant 0 : index
    %c0_3 = arith.constant 0 : index
    %7 = vector.load %arg3[%c0_1, %c0_2, %c0_3] : memref<9x4x8xf32, #tpu.memory_space<vmem>>, vector<1x4x8xf32>
    %8 = vector.shape_cast %7 : vector<1x4x8xf32> to vector<4x8xf32>
    %cst_4 = arith.constant dense<0.000000e+00> : vector<72x8xf32>
    %9 = tpu.matmul %6, %8, %cst_4 {dimension_numbers = #tpu.dot_dimension_numbers<[1], [0], [0], [1], [0, 0, 1, 1], [], []>} : vector<72x4xf32>, vector<4x8xf32>, vector<72x8xf32> -> vector<72x8xf32>
    %10 = arith.addf %2, %9 : vector<72x8xf32>
    %c1_i32 = arith.constant 1 : i32
    %11 = arith.addi %1, %c1_i32 : i32
    %c0_5 = arith.constant 0 : index
    %12 = arith.index_cast %11 : i32 to index
    %c0_6 = arith.constant 0 : index
    %13 = vector.load %arg2[%c0_5, %12, %c0_6] : memref<1x328x4xf32, #tpu.memory_space<vmem>>, vector<1x72x4xf32>
    %14 = vector.shape_cast %13 : vector<1x72x4xf32> to vector<72x4xf32>
    %c1 = arith.constant 1 : index
    %c0_7 = arith.constant 0 : index
    %c0_8 = arith.constant 0 : index
    %15 = vector.load %arg3[%c1, %c0_7, %c0_8] : memref<9x4x8xf32, #tpu.memory_space<vmem>>, vector<1x4x8xf32>
    %16 = vector.shape_cast %15 : vector<1x4x8xf32> to vector<4x8xf32>
    %cst_9 = arith.constant dense<0.000000e+00> : vector<72x8xf32>
    %17 = tpu.matmul %14, %16, %cst_9 {dimension_numbers = #tpu.dot_dimension_numbers<[1], [0], [0], [1], [0, 0, 1, 1], [], []>} : vector<72x4xf32>, vector<4x8xf32>, vector<72x8xf32> -> vector<72x8xf32>
    %18 = arith.addf %10, %17 : vector<72x8xf32>
    %c2_i32 = arith.constant 2 : i32
    %19 = arith.addi %1, %c2_i32 : i32
    %c0_10 = arith.constant 0 : index
    %20 = arith.index_cast %19 : i32 to index
    %c0_11 = arith.constant 0 : index
    %21 = vector.load %arg2[%c0_10, %20, %c0_11] : memref<1x328x4xf32, #tpu.memory_space<vmem>>, vector<1x72x4xf32>
    %22 = vector.shape_cast %21 : vector<1x72x4xf32> to vector<72x4xf32>
    %c2 = arith.constant 2 : index
    %c0_12 = arith.constant 0 : index
    %c0_13 = arith.constant 0 : index
    %23 = vector.load %arg3[%c2, %c0_12, %c0_13] : memref<9x4x8xf32, #tpu.memory_space<vmem>>, vector<1x4x8xf32>
    %24 = vector.shape_cast %23 : vector<1x4x8xf32> to vector<4x8xf32>
    %cst_14 = arith.constant dense<0.000000e+00> : vector<72x8xf32>
    %25 = tpu.matmul %22, %24, %cst_14 {dimension_numbers = #tpu.dot_dimension_numbers<[1], [0], [0], [1], [0, 0, 1, 1], [], []>} : vector<72x4xf32>, vector<4x8xf32>, vector<72x8xf32> -> vector<72x8xf32>
    %26 = arith.addf %18, %25 : vector<72x8xf32>
    %c18_i32 = arith.constant 18 : i32
    %27 = arith.addi %1, %c18_i32 : i32
    %c0_15 = arith.constant 0 : index
    %28 = arith.index_cast %27 : i32 to index
    %c0_16 = arith.constant 0 : index
    %29 = vector.load %arg2[%c0_15, %28, %c0_16] : memref<1x328x4xf32, #tpu.memory_space<vmem>>, vector<1x72x4xf32>
    %30 = vector.shape_cast %29 : vector<1x72x4xf32> to vector<72x4xf32>
    %c3 = arith.constant 3 : index
    %c0_17 = arith.constant 0 : index
    %c0_18 = arith.constant 0 : index
    %31 = vector.load %arg3[%c3, %c0_17, %c0_18] : memref<9x4x8xf32, #tpu.memory_space<vmem>>, vector<1x4x8xf32>
    %32 = vector.shape_cast %31 : vector<1x4x8xf32> to vector<4x8xf32>
    %cst_19 = arith.constant dense<0.000000e+00> : vector<72x8xf32>
    %33 = tpu.matmul %30, %32, %cst_19 {dimension_numbers = #tpu.dot_dimension_numbers<[1], [0], [0], [1], [0, 0, 1, 1], [], []>} : vector<72x4xf32>, vector<4x8xf32>, vector<72x8xf32> -> vector<72x8xf32>
    %34 = arith.addf %26, %33 : vector<72x8xf32>
    %c19_i32 = arith.constant 19 : i32
    %35 = arith.addi %1, %c19_i32 : i32
    %c0_20 = arith.constant 0 : index
    %36 = arith.index_cast %35 : i32 to index
    %c0_21 = arith.constant 0 : index
    %37 = vector.load %arg2[%c0_20, %36, %c0_21] : memref<1x328x4xf32, #tpu.memory_space<vmem>>, vector<1x72x4xf32>
    %38 = vector.shape_cast %37 : vector<1x72x4xf32> to vector<72x4xf32>
    %c4 = arith.constant 4 : index
    %c0_22 = arith.constant 0 : index
    %c0_23 = arith.constant 0 : index
    %39 = vector.load %arg3[%c4, %c0_22, %c0_23] : memref<9x4x8xf32, #tpu.memory_space<vmem>>, vector<1x4x8xf32>
    %40 = vector.shape_cast %39 : vector<1x4x8xf32> to vector<4x8xf32>
    %cst_24 = arith.constant dense<0.000000e+00> : vector<72x8xf32>
    %41 = tpu.matmul %38, %40, %cst_24 {dimension_numbers = #tpu.dot_dimension_numbers<[1], [0], [0], [1], [0, 0, 1, 1], [], []>} : vector<72x4xf32>, vector<4x8xf32>, vector<72x8xf32> -> vector<72x8xf32>
    %42 = arith.addf %34, %41 : vector<72x8xf32>
    %c20_i32 = arith.constant 20 : i32
    %43 = arith.addi %1, %c20_i32 : i32
    %c0_25 = arith.constant 0 : index
    %44 = arith.index_cast %43 : i32 to index
    %c0_26 = arith.constant 0 : index
    %45 = vector.load %arg2[%c0_25, %44, %c0_26] : memref<1x328x4xf32, #tpu.memory_space<vmem>>, vector<1x72x4xf32>
    %46 = vector.shape_cast %45 : vector<1x72x4xf32> to vector<72x4xf32>
    %c5 = arith.constant 5 : index
    %c0_27 = arith.constant 0 : index
    %c0_28 = arith.constant 0 : index
    %47 = vector.load %arg3[%c5, %c0_27, %c0_28] : memref<9x4x8xf32, #tpu.memory_space<vmem>>, vector<1x4x8xf32>
    %48 = vector.shape_cast %47 : vector<1x4x8xf32> to vector<4x8xf32>
    %cst_29 = arith.constant dense<0.000000e+00> : vector<72x8xf32>
    %49 = tpu.matmul %46, %48, %cst_29 {dimension_numbers = #tpu.dot_dimension_numbers<[1], [0], [0], [1], [0, 0, 1, 1], [], []>} : vector<72x4xf32>, vector<4x8xf32>, vector<72x8xf32> -> vector<72x8xf32>
    %50 = arith.addf %42, %49 : vector<72x8xf32>
    %c36_i32 = arith.constant 36 : i32
    %51 = arith.addi %1, %c36_i32 : i32
    %c0_30 = arith.constant 0 : index
    %52 = arith.index_cast %51 : i32 to index
    %c0_31 = arith.constant 0 : index
    %53 = vector.load %arg2[%c0_30, %52, %c0_31] : memref<1x328x4xf32, #tpu.memory_space<vmem>>, vector<1x72x4xf32>
    %54 = vector.shape_cast %53 : vector<1x72x4xf32> to vector<72x4xf32>
    %c6 = arith.constant 6 : index
    %c0_32 = arith.constant 0 : index
    %c0_33 = arith.constant 0 : index
    %55 = vector.load %arg3[%c6, %c0_32, %c0_33] : memref<9x4x8xf32, #tpu.memory_space<vmem>>, vector<1x4x8xf32>
    %56 = vector.shape_cast %55 : vector<1x4x8xf32> to vector<4x8xf32>
    %cst_34 = arith.constant dense<0.000000e+00> : vector<72x8xf32>
    %57 = tpu.matmul %54, %56, %cst_34 {dimension_numbers = #tpu.dot_dimension_numbers<[1], [0], [0], [1], [0, 0, 1, 1], [], []>} : vector<72x4xf32>, vector<4x8xf32>, vector<72x8xf32> -> vector<72x8xf32>
    %58 = arith.addf %50, %57 : vector<72x8xf32>
    %c37_i32 = arith.constant 37 : i32
    %59 = arith.addi %1, %c37_i32 : i32
    %c0_35 = arith.constant 0 : index
    %60 = arith.index_cast %59 : i32 to index
    %c0_36 = arith.constant 0 : index
    %61 = vector.load %arg2[%c0_35, %60, %c0_36] : memref<1x328x4xf32, #tpu.memory_space<vmem>>, vector<1x72x4xf32>
    %62 = vector.shape_cast %61 : vector<1x72x4xf32> to vector<72x4xf32>
    %c7 = arith.constant 7 : index
    %c0_37 = arith.constant 0 : index
    %c0_38 = arith.constant 0 : index
    %63 = vector.load %arg3[%c7, %c0_37, %c0_38] : memref<9x4x8xf32, #tpu.memory_space<vmem>>, vector<1x4x8xf32>
    %64 = vector.shape_cast %63 : vector<1x4x8xf32> to vector<4x8xf32>
    %cst_39 = arith.constant dense<0.000000e+00> : vector<72x8xf32>
    %65 = tpu.matmul %62, %64, %cst_39 {dimension_numbers = #tpu.dot_dimension_numbers<[1], [0], [0], [1], [0, 0, 1, 1], [], []>} : vector<72x4xf32>, vector<4x8xf32>, vector<72x8xf32> -> vector<72x8xf32>
    %66 = arith.addf %58, %65 : vector<72x8xf32>
    %c38_i32 = arith.constant 38 : i32
    %67 = arith.addi %1, %c38_i32 : i32
    %c0_40 = arith.constant 0 : index
    %68 = arith.index_cast %67 : i32 to index
    %c0_41 = arith.constant 0 : index
    %69 = vector.load %arg2[%c0_40, %68, %c0_41] : memref<1x328x4xf32, #tpu.memory_space<vmem>>, vector<1x72x4xf32>
    %70 = vector.shape_cast %69 : vector<1x72x4xf32> to vector<72x4xf32>
    %c8 = arith.constant 8 : index
    %c0_42 = arith.constant 0 : index
    %c0_43 = arith.constant 0 : index
    %71 = vector.load %arg3[%c8, %c0_42, %c0_43] : memref<9x4x8xf32, #tpu.memory_space<vmem>>, vector<1x4x8xf32>
    %72 = vector.shape_cast %71 : vector<1x4x8xf32> to vector<4x8xf32>
    %cst_44 = arith.constant dense<0.000000e+00> : vector<72x8xf32>
    %73 = tpu.matmul %70, %72, %cst_44 {dimension_numbers = #tpu.dot_dimension_numbers<[1], [0], [0], [1], [0, 0, 1, 1], [], []>} : vector<72x4xf32>, vector<4x8xf32>, vector<72x8xf32> -> vector<72x8xf32>
    %74 = arith.addf %66, %73 : vector<72x8xf32>
    %cst_45 = arith.constant 0.000000e+00 : f32
    %75 = vector.broadcast %cst_45 : f32 to vector<72x8xf32>
    %76 = arith.maximumf %74, %75 : vector<72x8xf32>
    %c0_46 = arith.constant 0 : index
    %c0_47 = arith.constant 0 : index
    %c0_48 = arith.constant 0 : index
    %77 = vector.load %arg4[%c0_46, %c0_47, %c0_48] : memref<1x72x8xf32, #tpu.memory_space<vmem>>, vector<1x72x8xf32>
    %78 = vector.shape_cast %77 : vector<1x72x8xf32> to vector<72x8xf32>
    %79 = vector.shape_cast %76 : vector<72x8xf32> to vector<1x72x8xf32>
    tpu.vector_store %arg4[%c0_46, %c0_47, %c0_48], %79 {strides = array<i32>} : memref<1x72x8xf32, #tpu.memory_space<vmem>>, vector<1x72x8xf32>,
    return
  }
  func.func @transform_0(%arg0: i32, %arg1: i32) -> (i32, i32, i32) {
    %c0_i32 = arith.constant 0 : i32
    %c0_i32_0 = arith.constant 0 : i32
    %c0_i32_1 = arith.constant 0 : i32
    return %arg0, %c0_i32, %c0_i32_0 : i32, i32, i32
  }
  func.func @transform_1(%arg0: i32, %arg1: i32) -> (i32, i32, i32) {
    %c0_i32 = arith.constant 0 : i32
    %c0_i32_0 = arith.constant 0 : i32
    %c0_i32_1 = arith.constant 0 : i32
    %c0_i32_2 = arith.constant 0 : i32
    return %c0_i32, %c0_i32_0, %c0_i32_1 : i32, i32, i32
  }
  func.func @transform_2(%arg0: i32, %arg1: i32) -> (i32, i32, i32) {
    %c0_i32 = arith.constant 0 : i32
    %c0_i32_0 = arith.constant 0 : i32
    return %arg0, %arg1, %c0_i32 : i32, i32, i32
  }
}

</mosaic_0001>

<bundles_post_ra>
// kernel: tpu_custom_call.1
= control target key start
LH: loop header
LB: loop body
LE: loop exit
PB: predicated region body
PF: predicated region fallthrough
CT: control target
= control target key end

     0   :  { %s2505_s9 = smov 0   ;;  %s2507_s10 = smov 0   ;;  %s2947_s0 = inlined_call_operand.vmem [shape: f32[2,328,4], index: 0, kind: input, shape index: {}]   ;;  %s2948_s1 = inlined_call_operand.vmem [shape: f32[9,4,8], index: 1, kind: input, shape index: {}]   ;;  %s2949_s2 = inlined_call_operand.vmem [shape: f32[2,288,8], index: 2, kind: output, shape index: {}]  }
   0x1   :  { %s2509_s11 = smov 0   ;;  %s2511_s12 = smov 0  }
   0x2   :  { %s2513_s13 = smov 0  }
   0x3 LB: > { %s21_s14 = sadd.s32 1, %s2478_s11  ;;  %s24_s15 = sadd.s32 1, %s2482_s12  ;;  %s2486_s13 = sphi %s2513_s13, %s12_s13   ;;  %s2482_s12 = sphi %s2511_s12, %s2953_s12   ;;  %s2478_s11 = sphi %s2509_s11, %s2952_s11   ;;  %s2474_s10 = sphi %s2507_s10, %s2951_s10   ;;  %s2470_s9 = sphi %s2505_s9, %s2950_s9  }
   0x4   : > { %p22_p0 = scmp.ge.s32.totalorder %s21_s14, 4  ;;  %p1741_p1 = scmp.ge.s32.totalorder %s2486_s13, 1 }
   0x5   : > { %p126_p2 = scmp.lt.s32.totalorder %s2486_s13, 9 }
   0x6   : > { %s2955_s14 = smov (%p22_p0, %s21_s14), 0  ;;  %s2957_s15 = smov (!%p22_p0, %s24_s15), %s2482_s12 }
   0x7   : > { %p127_p3 = pnand %p1741_p1, %p126_p2  ;;  %p26_p4 = scmp.ge.s32.totalorder %s2957_s15, 2 }
   0x8   : > { %vm220_vm0 = vcmask (!%p127_p3), 1043456   ;;  %v2540_v0 = vld [vmem:[%s2948_s1 + $0x10] sm:$0xf] (!%p127_p3)  ;;  %v1753_v1 = vld [vmem:[%s2948_s1 + $0x4] sm:$0xf] (!%p127_p3)  ;;  %v2488_v2 = vmov (!%p127_p3), 0.0  }
   0x9   : > { %s2959_s15 = smov (%p26_p4, %s2957_s15), 0  ;;  %130 = sbr.rel (%p127_p3) target bundleno = 399 (0x18f), region = 28 }
   0xa   : > { %2122 = vmatprep.subr.mxu0 (!%p127_p3), %v2488_v2  ;;  %2006 = vmatprep.subr.mxu1 (!%p127_p3), %v2488_v2  ;;  %p152_p5 = scmp.lt.s32.totalorder (!%p127_p3), %s2474_s10, 1  ;;  %vm2489_vm1 = vmmov (!%p127_p3), 0   ;;  %s167_s20 = smul.u32 (!%p127_p3), 72, %s2470_s9  ;;  %vm192_vm2 = vcmask (!%p127_p3), 31744   ;;  %v1843_v3 = vld [vmem:[%s2948_s1 + $0x14] sm:$0xf] (!%p127_p3) }
   0xb   : > { %2123 = vmatpush3.msk.msra.mxu0 (!%p127_p3), %vm220_vm0, %v2540_v0  ;;  %2007 = vmatpush3.msk.msra.mxu1 (!%p127_p3), %vm220_vm0, %v1753_v1  ;;  %v178_v6 = vld [vmem:[%s2948_s1] sm:$0xf] (!%p127_p3)  ;;  %v1863_v17 = vld [vmem:[%s2948_s1 + $0x18] sm:$0xf] (!%p127_p3)  ;;  %v1783_v26 = vld [vmem:[%s2948_s1 + $0x8] sm:$0xf] (!%p127_p3) }
   0xc   : > { %2008 = vmatprep.mubr.msk.f32.mxu1 (!%p127_p3), %vm2489_vm1, %v2488_v2  ;;  %2124 = vmatprep.mubr.msk.f32.mxu0 (!%p127_p3), %vm2489_vm1, %v2488_v2  ;;  %v1883_v36 = vld [vmem:[%s2948_s1 + $0x1c] sm:$0xf] (!%p127_p3)  ;;  %v1803_v41 = vld [vmem:[%s2948_s1 + $0xc] sm:$0xf] (!%p127_p3)  ;;  %v1903_v50 = vld [vmem:[%s2948_s1 + $0x20] sm:$0xf] (!%p127_p3) }
   0xd   : > { %2151 = vmatprep.subr.mxu0 (!%p127_p3), %v2488_v2  ;;  %2035 = vmatprep.subr.mxu1 (!%p127_p3), %v2488_v2  ;;  %s157_s19 = smul.u32 (!%p127_p3), 9, %s2470_s9  ;;  %vm1617_vm3 = vcmask (!%p127_p3), 64512  }
   0xf   : > { %p160_p6 = scmp.lt.s32.totalorder (!%p127_p3), %s157_s19, 35 }
  0x10   : > { %s2961_s10 = smov (!%p152_p5, %s2474_s10), 1 }
  0x11   : > { %s2404_s21 = smul.u32 328, %s2961_s10  ;;  %s2963_s19 = smov (!%p160_p6, %s157_s19), 35 }
  0x13   : > { %s156_s24 = scalar_lea.vmem %s2947_s0, %s2404_s21 }
  0x14   : > { %s2563_s25 = scalar_lea.vmem %s156_s24, %s167_s20  ;;  %s2405_s20 = smul.u32 36, %s2961_s10 }
  0x15   : > { %v1744_v4 = vld [vmem:[%s2563_s25 + $0x1] sm:$0xff]  ;;  %v1814_v5 = vld [vmem:[%s2563_s25 + $0x13] sm:$0xff]  ;;  %v1745_v7 = vld [vmem:[%s2563_s25 + $0x9] sm:$0xff] }
  0x16   : > { %2009 = vmatmul.mubr.msk.f32.vlgmr.msra.gmra.mrb[0].mxu1 %vm192_vm2, %v1744_v4  ;;  %2125 = vmatmul.mubr.msk.f32.vlgmr.msra.gmra.mrb[0].mxu0 %vm192_vm2, %v1814_v5  ;;  %v1815_v8 = vld [vmem:[%s2563_s25 + $0x1b] sm:$0xff]  ;;  %v1746_v9 = vld [vmem:[%s2563_s25 + $0x11] sm:$0xff]  ;;  %v1816_v10 = vld [vmem:[%s2563_s25 + $0x23] sm:$0xff]  ;;  %s163_s21 = sadd.s32 %s2405_s20, %s2963_s19 }
  0x17   : > { %2152 = vmatpush3.msk.msra.mxu0 %vm220_vm0, %v1843_v3  ;;  %2011 = vmatprep.mubr.msk.f32.mxu1 %vm2489_vm1, %v2488_v2  ;;  %v1747_v11 = vld [vmem:[%s2563_s25 + $0x19] sm:$0xff]  ;;  %v1817_v12 = vld [vmem:[%s2563_s25 + $0x2b] sm:$0xff]  ;;  %v1748_v13 = vld [vmem:[%s2563_s25 + $0x21] sm:$0xff]  ;;  %s1743_s22 = sshll.u32 %s163_s21, 3 }
  0x18   : > { %2127 = vmatprep.mubr.msk.f32.mxu0 %vm2489_vm1, %v2488_v2  ;;  %2036 = vmatpush3.msk.msra.mxu1 %vm220_vm0, %v178_v6  ;;  %v1818_v14 = vld [vmem:[%s2563_s25 + $0x33] sm:$0xff]  ;;  %v1749_v15 = vld [vmem:[%s2563_s25 + $0x29] sm:$0xff]  ;;  %v1835_v19 = vld [vmem:[%s2563_s25 + $0x1c] sm:$0xff] }
  0x19   : > { %2180 = vmatprep.subr.mxu0 %v2488_v2  ;;  %2064 = vmatprep.subr.mxu1 %v2488_v2  ;;  %v1834_v16 = vld [vmem:[%s2563_s25 + $0x14] sm:$0xff]  ;;  %v1836_v21 = vld [vmem:[%s2563_s25 + $0x24] sm:$0xff]  ;;  %v1837_v23 = vld [vmem:[%s2563_s25 + $0x2c] sm:$0xff] }
  0x1a   : > { %2012 = vmatmul.mubr.msk.f32.gmra.mrb[2].mxu1 %vm192_vm2, %v1745_v7  ;;  %2128 = vmatmul.mubr.msk.f32.gmra.mrb[2].mxu0 %vm192_vm2, %v1815_v8  ;;  %v1750_v18 = vld [vmem:[%s2563_s25 + $0x31] sm:$0xff]  ;;  %v1751_v20 = vld [vmem:[%s2563_s25 + $0x39] sm:$0xff]  ;;  %v1752_v22 = vld [vmem:[%s2563_s25 + $0x41] sm:$0xff] }
  0x1b   : > { %2014 = vmatprep.mubr.msk.f32.mxu1 %vm2489_vm1, %v2488_v2  ;;  %2130 = vmatprep.mubr.msk.f32.mxu0 %vm2489_vm1, %v2488_v2  ;;  %v169_v24 = vld [vmem:[%s2563_s25] sm:$0xff]  ;;  %v1838_v25 = vld [vmem:[%s2563_s25 + $0x34] sm:$0xff]  ;;  %v170_v27 = vld [vmem:[%s2563_s25 + $0x8] sm:$0xff] }
  0x1c   : > { %v1839_v28 = vld [vmem:[%s2563_s25 + $0x3c] sm:$0xff]  ;;  %v171_v29 = vld [vmem:[%s2563_s25 + $0x10] sm:$0xff]  ;;  %v1840_v30 = vld [vmem:[%s2563_s25 + $0x44] sm:$0xff] }
  0x1d   : > { %v172_v31 = vld [vmem:[%s2563_s25 + $0x18] sm:$0xff]  ;;  %v1841_v32 = vld [vmem:[%s2563_s25 + $0x4c] sm:$0xff]  ;;  %v173_v33 = vld [vmem:[%s2563_s25 + $0x20] sm:$0xff] }
  0x1e   : > { %2015 = vmatmul.mubr.msk.f32.gmra.mrb[4].mxu1 %vm192_vm2, %v1746_v9  ;;  %2131 = vmatmul.mubr.msk.f32.gmra.mrb[4].mxu0 %vm192_vm2, %v1816_v10  ;;  %v1842_v34 = vld [vmem:[%s2563_s25 + $0x54] sm:$0xff]  ;;  %v174_v35 = vld [vmem:[%s2563_s25 + $0x28] sm:$0xff]  ;;  %v177_v39 = vld [vmem:[%s2563_s25 + $0x40] sm:$0xff] }
  0x1f   : > { %2017 = vmatprep.mubr.msk.f32.mxu1 %vm2489_vm1, %v2488_v2  ;;  %2133 = vmatprep.mubr.msk.f32.mxu0 %vm2489_vm1, %v2488_v2  ;;  %v175_v37 = vld [vmem:[%s2563_s25 + $0x30] sm:$0xff]  ;;  %v176_v38 = vld [vmem:[%s2563_s25 + $0x38] sm:$0xff]  ;;  %v1774_v40 = vld [vmem:[%s2563_s25 + $0x2] sm:$0xff] }
  0x20   : > { %v1775_v42 = vld [vmem:[%s2563_s25 + $0xa] sm:$0xff]  ;;  %v1776_v43 = vld [vmem:[%s2563_s25 + $0x12] sm:$0xff]  ;;  %v1777_v44 = vld [vmem:[%s2563_s25 + $0x1a] sm:$0xff] }
  0x21   : > { %v1861_v45 = vld [vmem:[%s2563_s25 + $0x5c] sm:$0xff]  ;;  %v1862_v47 = vld [vmem:[%s2563_s25 + $0x64] sm:$0xff]  ;;  %v1780_v51 = vld [vmem:[%s2563_s25 + $0x32] sm:$0xff] }
  0x22   : > { %2018 = vmatmul.mubr.msk.f32.gmra.mrb[6].mxu1 %vm192_vm2, %v1747_v11  ;;  %2134 = vmatmul.mubr.msk.f32.gmra.mrb[6].mxu0 %vm192_vm2, %v1817_v12  ;;  %v1778_v46 = vld [vmem:[%s2563_s25 + $0x22] sm:$0xff]  ;;  %v1779_v48 = vld [vmem:[%s2563_s25 + $0x2a] sm:$0xff]  ;;  %v1781_v53 = vld [vmem:[%s2563_s25 + $0x3a] sm:$0xff] }
  0x23   : > { %2020 = vmatprep.mubr.msk.f32.mxu1 %vm2489_vm1, %v2488_v2  ;;  %2136 = vmatprep.mubr.msk.f32.mxu0 %vm2489_vm1, %v2488_v2  ;;  %v1874_v49 = vld [vmem:[%s2563_s25 + $0x25] sm:$0xff]  ;;  %v1875_v52 = vld [vmem:[%s2563_s25 + $0x2d] sm:$0xff]  ;;  %v1876_v54 = vld [vmem:[%s2563_s25 + $0x35] sm:$0xff] }
  0x24   : > { %v1782_v55 = vld [vmem:[%s2563_s25 + $0x42] sm:$0xff]  ;;  %v1879_v58 = vld [vmem:[%s2563_s25 + $0x4d] sm:$0xff]  ;;  %v1880_v59 = vld [vmem:[%s2563_s25 + $0x55] sm:$0xff] }
  0x25   : > { %v1877_v56 = vld [vmem:[%s2563_s25 + $0x3d] sm:$0xff]  ;;  %v1878_v57 = vld [vmem:[%s2563_s25 + $0x45] sm:$0xff]  ;;  %v1895_v63 = vld [vmem:[%s2563_s25 + $0x2e] sm:$0xff] }
  0x26   : > { %2021 = vmatmul.mubr.msk.f32.gmra.mrb[8].mxu1 %vm192_vm2, %v1748_v13  ;;  %2137 = vmatmul.mubr.msk.f32.gmra.mrb[8].mxu0 %vm192_vm2, %v1818_v14  ;;  %v1881_v60 = vld [vmem:[%s2563_s25 + $0x5d] sm:$0xff]  ;;  %v1882_v61 = vld [vmem:[%s2563_s25 + $0x65] sm:$0xff]  ;;  %v1802_v3 = vld [vmem:[%s2563_s25 + $0x52] sm:$0xff] }
  0x27   : > { %2023 = vmatprep.mubr.msk.f32.mxu1 %vm2489_vm1, %v2488_v2  ;;  %2153 = vmatprep.mubr.msk.f32.mxu0 %vm2489_vm1, %v2488_v2  ;;  %v1894_v62 = vld [vmem:[%s2563_s25 + $0x26] sm:$0xff]  ;;  %v1896_v1 = vld [vmem:[%s2563_s25 + $0x36] sm:$0xff]  ;;  %v1897_v4 = vld [vmem:[%s2563_s25 + $0x3e] sm:$0xff] }
  0x28   : > { %v1819_v5 = vld [vmem:[%s2563_s25 + $0x3b] sm:$0xff]  ;;  %v1898_v6 = vld [vmem:[%s2563_s25 + $0x46] sm:$0xff]  ;;  %v1899_v8 = vld [vmem:[%s2563_s25 + $0x4e] sm:$0xff] }
  0x29   : > { %v1820_v7 = vld [vmem:[%s2563_s25 + $0x43] sm:$0xff]  ;;  %v1821_v9 = vld [vmem:[%s2563_s25 + $0x4b] sm:$0xff]  ;;  %v1900_v10 = vld [vmem:[%s2563_s25 + $0x56] sm:$0xff] }
  0x2a   : > { %2024 = vmatmul.mubr.msk.f32.gmra.mrb[10].mxu1 %vm192_vm2, %v1749_v15  ;;  %2154 = vmatmul.mubr.msk.f32.vlgmr.msra.gmra.mrb[0].mxu0 %vm192_vm2, %v1834_v16  ;;  %v1822_v11 = vld [vmem:[%s2563_s25 + $0x53] sm:$0xff]  ;;  %v1901_v12 = vld [vmem:[%s2563_s25 + $0x5e] sm:$0xff]  ;;  %v1902_v13 = vld [vmem:[%s2563_s25 + $0x66] sm:$0xff] }
  0x2b   : > { %2181 = vmatpush3.msk.msra.mxu0 %vm220_vm0, %v1863_v17  ;;  %2026 = vmatprep.mubr.msk.f32.mxu1 %vm2489_vm1, %v2488_v2 }
  0x2c   : > { %2156 = vmatprep.mubr.msk.f32.mxu0 %vm2489_vm1, %v2488_v2  ;;  %2209 = vmatprep.subr.mxu0 %v2488_v2 }
  0x2e   : > { %2027 = vmatmul.mubr.msk.f32.gmra.mrb[12].mxu1 %vm192_vm2, %v1750_v18  ;;  %2157 = vmatmul.mubr.msk.f32.gmra.mrb[2].mxu0 %vm192_vm2, %v1835_v19 }
  0x2f   : > { %2029 = vmatprep.mubr.msk.f32.mxu1 %vm2489_vm1, %v2488_v2  ;;  %2159 = vmatprep.mubr.msk.f32.mxu0 %vm2489_vm1, %v2488_v2 }
  0x32   : > { %2030 = vmatmul.mubr.msk.f32.gmra.mrb[14].mxu1 %vm192_vm2, %v1751_v20  ;;  %2160 = vmatmul.mubr.msk.f32.gmra.mrb[4].mxu0 %vm192_vm2, %v1836_v21 }
  0x33   : > { %2032 = vmatprep.mubr.msk.f32.mxu1 %vm2489_vm1, %v2488_v2  ;;  %2162 = vmatprep.mubr.msk.f32.mxu0 %vm2489_vm1, %v2488_v2 }
  0x36   : > { %2033 = vmatmul.mubr.msk.f32.gmra.mrb[16].mxu1 %vm192_vm2, %v1752_v22  ;;  %2163 = vmatmul.mubr.msk.f32.gmra.mrb[6].mxu0 %vm192_vm2, %v1837_v23 }
  0x37   : > { %2037 = vmatprep.mubr.msk.f32.mxu1 %vm2489_vm1, %v2488_v2  ;;  %2165 = vmatprep.mubr.msk.f32.mxu0 %vm2489_vm1, %v2488_v2 }
  0x3a   : > { %2038 = vmatmul.mubr.msk.f32.vlgmr.msra.gmra.mrb[0].mxu1 %vm192_vm2, %v169_v24  ;;  %2166 = vmatmul.mubr.msk.f32.gmra.mrb[8].mxu0 %vm192_vm2, %v1838_v25 }
  0x3b   : > { %2040 = vmatprep.mubr.msk.f32.mxu1 %vm2489_vm1, %v2488_v2  ;;  %2168 = vmatprep.mubr.msk.f32.mxu0 %vm2489_vm1, %v2488_v2 }
  0x3c   : > { %2065 = vmatpush3.msk.msra.mxu1 %vm220_vm0, %v1783_v26 }
  0x3d   : > { %2093 = vmatprep.subr.mxu1 %v2488_v2 }
  0x3e   : > { %2041 = vmatmul.mubr.msk.f32.gmra.mrb[2].mxu1 %vm192_vm2, %v170_v27  ;;  %2169 = vmatmul.mubr.msk.f32.gmra.mrb[10].mxu0 %vm192_vm2, %v1839_v28 }
  0x3f   : > { %2043 = vmatprep.mubr.msk.f32.mxu1 %vm2489_vm1, %v2488_v2  ;;  %2171 = vmatprep.mubr.msk.f32.mxu0 %vm2489_vm1, %v2488_v2 }
  0x42   : > { %2044 = vmatmul.mubr.msk.f32.gmra.mrb[4].mxu1 %vm192_vm2, %v171_v29  ;;  %2172 = vmatmul.mubr.msk.f32.gmra.mrb[12].mxu0 %vm192_vm2, %v1840_v30 }
  0x43   : > { %2046 = vmatprep.mubr.msk.f32.mxu1 %vm2489_vm1, %v2488_v2  ;;  %2174 = vmatprep.mubr.msk.f32.mxu0 %vm2489_vm1, %v2488_v2 }
  0x46   : > { %2047 = vmatmul.mubr.msk.f32.gmra.mrb[6].mxu1 %vm192_vm2, %v172_v31  ;;  %2175 = vmatmul.mubr.msk.f32.gmra.mrb[14].mxu0 %vm192_vm2, %v1841_v32 }
  0x47   : > { %2049 = vmatprep.mubr.msk.f32.mxu1 %vm2489_vm1, %v2488_v2  ;;  %2177 = vmatprep.mubr.msk.f32.mxu0 %vm2489_vm1, %v2488_v2 }
  0x4a   : > { %2050 = vmatmul.mubr.msk.f32.gmra.mrb[8].mxu1 %vm192_vm2, %v173_v33  ;;  %2178 = vmatmul.mubr.msk.f32.gmra.mrb[16].mxu0 %vm192_vm2, %v1842_v34 }
  0x4b   : > { %2052 = vmatprep.mubr.msk.f32.mxu1 %vm2489_vm1, %v2488_v2  ;;  %2182 = vmatprep.mubr.msk.f32.mxu0 %vm2489_vm1, %v2488_v2 }
  0x4e   : > { %2053 = vmatmul.mubr.msk.f32.gmra.mrb[10].mxu1 %vm192_vm2, %v174_v35  ;;  %2183 = vmatmul.mubr.msk.f32.vlgmr.msra.gmra.mrb[0].mxu0 %vm192_vm2, %v1836_v21 }
  0x4f   : > { %2210 = vmatpush3.msk.msra.mxu0 %vm220_vm0, %v1883_v36  ;;  %2055 = vmatprep.mubr.msk.f32.mxu1 %vm2489_vm1, %v2488_v2 }
  0x50   : > { %2185 = vmatprep.mubr.msk.f32.mxu0 %vm2489_vm1, %v2488_v2  ;;  %2238 = vmatprep.subr.mxu0 %v2488_v2 }
  0x52   : > { %2056 = vmatmul.mubr.msk.f32.gmra.mrb[12].mxu1 %vm192_vm2, %v175_v37  ;;  %2186 = vmatmul.mubr.msk.f32.gmra.mrb[2].mxu0 %vm192_vm2, %v1837_v23 }
  0x53   : > { %2058 = vmatprep.mubr.msk.f32.mxu1 %vm2489_vm1, %v2488_v2  ;;  %2188 = vmatprep.mubr.msk.f32.mxu0 %vm2489_vm1, %v2488_v2 }
  0x56   : > { %2059 = vmatmul.mubr.msk.f32.gmra.mrb[14].mxu1 %vm192_vm2, %v176_v38  ;;  %2189 = vmatmul.mubr.msk.f32.gmra.mrb[4].mxu0 %vm192_vm2, %v1838_v25 }
  0x57   : > { %2061 = vmatprep.mubr.msk.f32.mxu1 %vm2489_vm1, %v2488_v2  ;;  %2191 = vmatprep.mubr.msk.f32.mxu0 %vm2489_vm1, %v2488_v2 }
  0x5a   : > { %2062 = vmatmul.mubr.msk.f32.gmra.mrb[16].mxu1 %vm192_vm2, %v177_v39  ;;  %2192 = vmatmul.mubr.msk.f32.gmra.mrb[6].mxu0 %vm192_vm2, %v1839_v28 }
  0x5b   : > { %2066 = vmatprep.mubr.msk.f32.mxu1 %vm2489_vm1, %v2488_v2  ;;  %2194 = vmatprep.mubr.msk.f32.mxu0 %vm2489_vm1, %v2488_v2 }
  0x5e   : > { %2067 = vmatmul.mubr.msk.f32.vlgmr.msra.gmra.mrb[0].mxu1 %vm192_vm2, %v1774_v40  ;;  %2195 = vmatmul.mubr.msk.f32.gmra.mrb[8].mxu0 %vm192_vm2, %v1840_v30 }
  0x5f   : > { %2069 = vmatprep.mubr.msk.f32.mxu1 %vm2489_vm1, %v2488_v2  ;;  %2197 = vmatprep.mubr.msk.f32.mxu0 %vm2489_vm1, %v2488_v2 }
  0x60   : > { %2094 = vmatpush3.msk.msra.mxu1 %vm220_vm0, %v1803_v41 }
  0x61   : > { %2267 = vmatprep.subr.mxu1 %v2488_v2 }
  0x62   : > { %2070 = vmatmul.mubr.msk.f32.gmra.mrb[2].mxu1 %vm192_vm2, %v1775_v42  ;;  %2198 = vmatmul.mubr.msk.f32.gmra.mrb[10].mxu0 %vm192_vm2, %v1841_v32 }
  0x63   : > { %2072 = vmatprep.mubr.msk.f32.mxu1 %vm2489_vm1, %v2488_v2  ;;  %2200 = vmatprep.mubr.msk.f32.mxu0 %vm2489_vm1, %v2488_v2 }
  0x66   : > { %2073 = vmatmul.mubr.msk.f32.gmra.mrb[4].mxu1 %vm192_vm2, %v1776_v43  ;;  %2201 = vmatmul.mubr.msk.f32.gmra.mrb[12].mxu0 %vm192_vm2, %v1842_v34 }
  0x67   : > { %2075 = vmatprep.mubr.msk.f32.mxu1 %vm2489_vm1, %v2488_v2  ;;  %2203 = vmatprep.mubr.msk.f32.mxu0 %vm2489_vm1, %v2488_v2 }
  0x6a   : > { %2076 = vmatmul.mubr.msk.f32.gmra.mrb[6].mxu1 %vm192_vm2, %v1777_v44  ;;  %2204 = vmatmul.mubr.msk.f32.gmra.mrb[14].mxu0 %vm192_vm2, %v1861_v45 }
  0x6b   : > { %2078 = vmatprep.mubr.msk.f32.mxu1 %vm2489_vm1, %v2488_v2  ;;  %2206 = vmatprep.mubr.msk.f32.mxu0 %vm2489_vm1, %v2488_v2 }
  0x6e   : > { %2079 = vmatmul.mubr.msk.f32.gmra.mrb[8].mxu1 %vm192_vm2, %v1778_v46  ;;  %2207 = vmatmul.mubr.msk.f32.gmra.mrb[16].mxu0 %vm192_vm2, %v1862_v47 }
  0x6f   : > { %2081 = vmatprep.mubr.msk.f32.mxu1 %vm2489_vm1, %v2488_v2  ;;  %2211 = vmatprep.mubr.msk.f32.mxu0 %vm2489_vm1, %v2488_v2 }
  0x72   : > { %2082 = vmatmul.mubr.msk.f32.gmra.mrb[10].mxu1 %vm192_vm2, %v1779_v48  ;;  %2212 = vmatmul.mubr.msk.f32.vlgmr.msra.gmra.mrb[0].mxu0 %vm192_vm2, %v1874_v49 }
  0x73   : > { %2239 = vmatpush3.msk.msra.mxu0 %vm220_vm0, %v1903_v50  ;;  %2084 = vmatprep.mubr.msk.f32.mxu1 %vm2489_vm1, %v2488_v2 }
  0x74   : > { %2214 = vmatprep.mubr.msk.f32.mxu0 %vm2489_vm1, %v2488_v2 }
  0x76   : > { %2085 = vmatmul.mubr.msk.f32.gmra.mrb[12].mxu1 %vm192_vm2, %v1780_v51  ;;  %2215 = vmatmul.mubr.msk.f32.gmra.mrb[2].mxu0 %vm192_vm2, %v1875_v52 }
  0x77   : > { %2087 = vmatprep.mubr.msk.f32.mxu1 %vm2489_vm1, %v2488_v2  ;;  %2217 = vmatprep.mubr.msk.f32.mxu0 %vm2489_vm1, %v2488_v2 }
  0x7a   : > { %2088 = vmatmul.mubr.msk.f32.gmra.mrb[14].mxu1 %vm192_vm2, %v1781_v53  ;;  %2218 = vmatmul.mubr.msk.f32.gmra.mrb[4].mxu0 %vm192_vm2, %v1876_v54 }
  0x7b   : > { %2090 = vmatprep.mubr.msk.f32.mxu1 %vm2489_vm1, %v2488_v2  ;;  %2220 = vmatprep.mubr.msk.f32.mxu0 %vm2489_vm1, %v2488_v2 }
  0x7e   : > { %2091 = vmatmul.mubr.msk.f32.gmra.mrb[16].mxu1 %vm192_vm2, %v1782_v55  ;;  %2221 = vmatmul.mubr.msk.f32.gmra.mrb[6].mxu0 %vm192_vm2, %v1877_v56 }
  0x7f   : > { %2095 = vmatprep.mubr.msk.f32.mxu1 %vm2489_vm1, %v2488_v2  ;;  %2223 = vmatprep.mubr.msk.f32.mxu0 %vm2489_vm1, %v2488_v2 }
  0x82   : > { %2096 = vmatmul.mubr.msk.f32.vlgmr.msra.gmra.mrb[0].mxu1 %vm192_vm2, %v1776_v43  ;;  %2224 = vmatmul.mubr.msk.f32.gmra.mrb[8].mxu0 %vm192_vm2, %v1878_v57 }
  0x83   : > { %2098 = vmatprep.mubr.msk.f32.mxu1 %vm2489_vm1, %v2488_v2  ;;  %2226 = vmatprep.mubr.msk.f32.mxu0 %vm2489_vm1, %v2488_v2 }
  0x84   : > { %2268 = vmatpush3.msk.msra.mxu1 %vm220_vm0, %v2540_v0  ;;  %v1801_v0 = vld [vmem:[%s2563_s25 + $0x4a] sm:$0xff]  ;;  %s2912_s25 = scalar_lea.vmem %s2949_s2, %s1743_s22 }
  0x86   : > { %2099 = vmatmul.mubr.msk.f32.gmra.mrb[2].mxu1 %vm192_vm2, %v1777_v44  ;;  %2227 = vmatmul.mubr.msk.f32.gmra.mrb[10].mxu0 %vm192_vm2, %v1879_v58 }
  0x87   : > { %2101 = vmatprep.mubr.msk.f32.mxu1 %vm2489_vm1, %v2488_v2  ;;  %2229 = vmatprep.mubr.msk.f32.mxu0 %vm2489_vm1, %v2488_v2 }
  0x8a   : > { %2102 = vmatmul.mubr.msk.f32.gmra.mrb[4].mxu1 %vm192_vm2, %v1778_v46  ;;  %2230 = vmatmul.mubr.msk.f32.gmra.mrb[12].mxu0 %vm192_vm2, %v1880_v59 }
  0x8b   : > { %2104 = vmatprep.mubr.msk.f32.mxu1 %vm2489_vm1, %v2488_v2  ;;  %2232 = vmatprep.mubr.msk.f32.mxu0 %vm2489_vm1, %v2488_v2 }
  0x8e   : > { %2105 = vmatmul.mubr.msk.f32.gmra.mrb[6].mxu1 %vm192_vm2, %v1779_v48  ;;  %2233 = vmatmul.mubr.msk.f32.gmra.mrb[14].mxu0 %vm192_vm2, %v1881_v60 }
  0x8f   : > { %2107 = vmatprep.mubr.msk.f32.mxu1 %vm2489_vm1, %v2488_v2  ;;  %2235 = vmatprep.mubr.msk.f32.mxu0 %vm2489_vm1, %v2488_v2 }
  0x92   : > { %2108 = vmatmul.mubr.msk.f32.gmra.mrb[8].mxu1 %vm192_vm2, %v1780_v51  ;;  %2236 = vmatmul.mubr.msk.f32.gmra.mrb[16].mxu0 %vm192_vm2, %v1882_v61 }
  0x93   : > { %2110 = vmatprep.mubr.msk.f32.mxu1 %vm2489_vm1, %v2488_v2  ;;  %2240 = vmatprep.mubr.msk.f32.mxu0 %vm2489_vm1, %v2488_v2 }
  0x96   : > { %2111 = vmatmul.mubr.msk.f32.gmra.mrb[10].mxu1 %vm192_vm2, %v1781_v53  ;;  %2241 = vmatmul.mubr.msk.f32.vlgmr.msra.gmra.mrb[0].mxu0 %vm192_vm2, %v1894_v62 }
  0x97   : > { %2113 = vmatprep.mubr.msk.f32.mxu1 %vm2489_vm1, %v2488_v2  ;;  %2243 = vmatprep.mubr.msk.f32.mxu0 %vm2489_vm1, %v2488_v2 }
  0x9a   : > { %2114 = vmatmul.mubr.msk.f32.gmra.mrb[12].mxu1 %vm192_vm2, %v1782_v55  ;;  %2244 = vmatmul.mubr.msk.f32.gmra.mrb[2].mxu0 %vm192_vm2, %v1895_v63 }
  0x9b   : > { %2116 = vmatprep.mubr.msk.f32.mxu1 %vm2489_vm1, %v2488_v2  ;;  %2246 = vmatprep.mubr.msk.f32.mxu0 %vm2489_vm1, %v2488_v2 }
  0x9e   : > { %2117 = vmatmul.mubr.msk.f32.gmra.mrb[14].mxu1 %vm192_vm2, %v1801_v0  ;;  %2247 = vmatmul.mubr.msk.f32.gmra.mrb[4].mxu0 %vm192_vm2, %v1896_v1 }
  0x9f   : > { %2119 = vmatprep.mubr.msk.f32.mxu1 %vm2489_vm1, %v2488_v2  ;;  %2249 = vmatprep.mubr.msk.f32.mxu0 %vm2489_vm1, %v2488_v2 }
  0xa2   : > { %2120 = vmatmul.mubr.msk.f32.gmra.mrb[16].mxu1 %vm192_vm2, %v1802_v3  ;;  %2250 = vmatmul.mubr.msk.f32.gmra.mrb[6].mxu0 %vm192_vm2, %v1897_v4 }
  0xa3   : > { %2139 = vmatprep.mubr.msk.f32.mxu1 %vm2489_vm1, %v2488_v2  ;;  %2252 = vmatprep.mubr.msk.f32.mxu0 %vm2489_vm1, %v2488_v2 }
  0xa6   : > { %2140 = vmatmul.mubr.msk.f32.vlgmr.msra.gmra.mrb[10].mxu1 %vm192_vm2, %v1819_v5  ;;  %2253 = vmatmul.mubr.msk.f32.gmra.mrb[8].mxu0 %vm192_vm2, %v1898_v6 }
  0xa7   : > { %2142 = vmatprep.mubr.msk.f32.mxu1 %vm2489_vm1, %v2488_v2  ;;  %2255 = vmatprep.mubr.msk.f32.mxu0 %vm2489_vm1, %v2488_v2 }
  0xaa   : > { %2143 = vmatmul.mubr.msk.f32.gmra.mrb[12].mxu1 %vm192_vm2, %v1820_v7  ;;  %2256 = vmatmul.mubr.msk.f32.gmra.mrb[10].mxu0 %vm192_vm2, %v1899_v8 }
  0xab   : > { %2145 = vmatprep.mubr.msk.f32.mxu1 %vm2489_vm1, %v2488_v2  ;;  %2258 = vmatprep.mubr.msk.f32.mxu0 %vm2489_vm1, %v2488_v2 }
  0xae   : > { %2146 = vmatmul.mubr.msk.f32.gmra.mrb[14].mxu1 %vm192_vm2, %v1821_v9  ;;  %2259 = vmatmul.mubr.msk.f32.gmra.mrb[12].mxu0 %vm192_vm2, %v1900_v10 }
  0xaf   : > { %2148 = vmatprep.mubr.msk.f32.mxu1 %vm2489_vm1, %v2488_v2  ;;  %2261 = vmatprep.mubr.msk.f32.mxu0 %vm2489_vm1, %v2488_v2 }
  0xb2   : > { %2149 = vmatmul.mubr.msk.f32.gmra.mrb[16].mxu1 %vm192_vm2, %v1822_v11  ;;  %2262 = vmatmul.mubr.msk.f32.gmra.mrb[14].mxu0 %vm192_vm2, %v1901_v12 }
  0xb3   : > { %2264 = vmatprep.mubr.msk.f32.mxu0 %vm2489_vm1, %v2488_v2 }
  0xb6   : > { %2265 = vmatmul.mubr.msk.f32.gmra.mrb[16].mxu0 %vm192_vm2, %v1902_v13 }
 0x155   : > { %v745_v14 = vpop.f32.mrb[0].mxu1 }
 0x156   : > { %v2097_v15 = vpop.f32.mrb[1].mxu1 }
 0x159   : > { %v750_v16 = vpop.f32.mrb[2].mxu1 }
 0x15a   : > { %v2100_v17 = vpop.f32.mrb[3].mxu1 }
 0x15d   : > { %v755_v18 = vpop.f32.mrb[4].mxu1 }
 0x15e   : > { %v2103_v19 = vpop.f32.mrb[5].mxu1 }
 0x161   : > { %v760_v20 = vpop.f32.mrb[6].mxu1 }
 0x162   : > { %v2106_v21 = vpop.f32.mrb[7].mxu1 }
 0x165   : > { %v765_v22 = vpop.f32.mrb[8].mxu1 }
 0x166   : > { %v2109_v23 = vpop.f32.mrb[9].mxu1 }
 0x169   : > { %v1555_v2 = vpop.f32.mrb[0].mxu0 }
 0x16a   : > { %v2269_v24 = vadd.f32 %v1555_v2, %v745_v14  ;;  %v2242_v25 = vpop.f32.mrb[1].mxu0 }
 0x16c   : > { %v1608_v26 = vmax.f32 %v2269_v24, 0.0 }
 0x16d   : > { %v1560_v27 = vpop.f32.mrb[2].mxu0 }
 0x16e   : > { %1618 = vst.msk [vmem:[%s2912_s25] sm:$0xff] %vm1617_vm3, %v1608_v26  ;;  %v2270_v28 = vadd.f32 %v1560_v27, %v750_v16  ;;  %v2245_v29 = vpop.f32.mrb[3].mxu0 }
 0x170   : > { %v1609_v30 = vmax.f32 %v2270_v28, 0.0 }
 0x171   : > { %v1565_v31 = vpop.f32.mrb[4].mxu0 }
 0x172   : > { %1619 = vst.msk [vmem:[%s2912_s25 + $0x8] sm:$0xff] %vm1617_vm3, %v1609_v30  ;;  %v2271_v32 = vadd.f32 %v1565_v31, %v755_v18  ;;  %v2248_v33 = vpop.f32.mrb[5].mxu0 }
 0x174   : > { %v1610_v34 = vmax.f32 %v2271_v32, 0.0 }
 0x175   : > { %v1570_v35 = vpop.f32.mrb[6].mxu0 }
 0x176   : > { %1620 = vst.msk [vmem:[%s2912_s25 + $0x10] sm:$0xff] %vm1617_vm3, %v1610_v34  ;;  %v2272_v36 = vadd.f32 %v1570_v35, %v760_v20  ;;  %v2251_v37 = vpop.f32.mrb[7].mxu0 }
 0x178   : > { %v1611_v38 = vmax.f32 %v2272_v36, 0.0 }
 0x179   : > { %v932_v39 = vpop.f32.mrb[10].mxu1  ;;  %v1575_v40 = vpop.f32.mrb[8].mxu0 }
 0x17a   : > { %1621 = vst.msk [vmem:[%s2912_s25 + $0x18] sm:$0xff] %vm1617_vm3, %v1611_v38  ;;  %v2273_v41 = vadd.f32 %v1575_v40, %v765_v22  ;;  %v2141_v42 = vpop.f32.mrb[11].mxu1  ;;  %v2254_v43 = vpop.f32.mrb[9].mxu0 }
 0x17c   : > { %v1612_v44 = vmax.f32 %v2273_v41, 0.0 }
 0x17d   : > { %v937_v45 = vpop.f32.mrb[12].mxu1  ;;  %v1580_v46 = vpop.f32.mrb[10].mxu0 }
 0x17e   : > { %1622 = vst.msk [vmem:[%s2912_s25 + $0x20] sm:$0xff] %vm1617_vm3, %v1612_v44  ;;  %v2274_v47 = vadd.f32 %v1580_v46, %v932_v39  ;;  %v2144_v48 = vpop.f32.mrb[13].mxu1  ;;  %v2257_v49 = vpop.f32.mrb[11].mxu0 }
 0x180   : > { %v1613_v50 = vmax.f32 %v2274_v47, 0.0 }
 0x181   : > { %v942_v51 = vpop.f32.mrb[14].mxu1  ;;  %v1585_v52 = vpop.f32.mrb[12].mxu0 }
 0x182   : > { %1623 = vst.msk [vmem:[%s2912_s25 + $0x28] sm:$0xff] %vm1617_vm3, %v1613_v50  ;;  %v2275_v53 = vadd.f32 %v1585_v52, %v937_v45  ;;  %v2147_v54 = vpop.f32.mrb[15].mxu1  ;;  %v2260_v55 = vpop.f32.mrb[13].mxu0 }
 0x184   : > { %v1614_v56 = vmax.f32 %v2275_v53, 0.0 }
 0x185   : > { %v947_v57 = vpop.f32.mrb[16].mxu1  ;;  %v1590_v58 = vpop.f32.mrb[14].mxu0 }
 0x186   : > { %1624 = vst.msk [vmem:[%s2912_s25 + $0x30] sm:$0xff] %vm1617_vm3, %v1614_v56  ;;  %v2276_v59 = vadd.f32 %v1590_v58, %v942_v51  ;;  %v2150_v60 = vpop.f32.mrb[17].mxu1  ;;  %v2263_v61 = vpop.f32.mrb[15].mxu0 }
 0x188   : > { %v1615_v62 = vmax.f32 %v2276_v59, 0.0 }
 0x189   : > { %v1595_v63 = vpop.f32.mrb[16].mxu0 }
 0x18a   : > { %1625 = vst.msk [vmem:[%s2912_s25 + $0x38] sm:$0xff] %vm1617_vm3, %v1615_v62  ;;  %v2277_v0 = vadd.f32 %v1595_v63, %v947_v57  ;;  %v2266_v1 = vpop.f32.mrb[17].mxu0 }
 0x18c   : > { %v1616_v3 = vmax.f32 %v2277_v0, 0.0 }
 0x18e   : > { %1626 = vst.msk [vmem:[%s2912_s25 + $0x40] sm:$0xff] %vm1617_vm3, %v1616_v3 }
 0x18f PF: > { %s12_s13 = sadd.s32 1, %s2486_s13   ;;  %s2950_s9 = smov %s2478_s11 }
 0x190   : > { %p9_p7 = scmp.ge.s32.totalorder %s12_s13, 10   ;;  %s2951_s10 = smov %s2482_s12 }
 0x191   : > { %s2952_s11 = smov %s2955_s14  ;;  %s2953_s12 = smov %s2959_s15 }
 0x192   :  { %11 = sbr.rel (!%p9_p7) target bundleno = 3 (0x3), region = 75 }

</bundles_post_ra>
